<compile_context>
chip_gen: v6e
topology: v6e:2x2x1
jax: 0.10.0
libtpu: 0.0.40
codegen_flags: <defaults>
</compile_context>

<pallas_src>
import jax
import jax.numpy as jnp
from jax.experimental import pallas as pl
from jax.experimental.pallas import tpu as pltpu

LANE = 128
SUBLANE = 16   # bf16 packs 2 rows per 32-bit sublane -> keep batch tiles 16-aligned


def _round_up(n, m):
    return ((n + m - 1) // m) * m


# -----------------------------------------------------------------------------
# Kernel: whole 5-layer MLP fused; one batch tile per grid step, weights resident.
# -----------------------------------------------------------------------------
def dqn_kernel(x_ref,
               w1_ref, b1_ref,
               w2_ref, b2_ref,
               w3_ref, b3_ref,
               w4_ref, b4_ref,
               w5_ref, b5_ref,
               out_ref):
    def hidden(h, w_ref, b_ref):
        # MXU consumes bf16, accumulates in f32; bias add + ReLU in f32 on the
        # VPU (v5e has no bf16 VPU path); store the activation in bf16 to halve
        # inter-layer VMEM traffic / vreg pressure.
        acc = jnp.dot(h, w_ref[...], preferred_element_type=jnp.float32)
        acc = acc + b_ref[...]
        return jnp.maximum(acc, 0.0).astype(jnp.bfloat16)

    h = x_ref[...]                                   # already bf16 (no layer-1 cast)
    h = hidden(h, w1_ref, b1_ref)
    h = hidden(h, w2_ref, b2_ref)
    h = hidden(h, w3_ref, b3_ref)
    h = hidden(h, w4_ref, b4_ref)
    acc = jnp.dot(h, w5_ref[...], preferred_element_type=jnp.float32) + b5_ref[...]
    out_ref[...] = acc.astype(out_ref.dtype)         # bf16, lane-dense writeback


# -----------------------------------------------------------------------------
# Parameters
# -----------------------------------------------------------------------------
def init_params(key, state_size, action_size):
    """PyTorch-Linear-style init. W:(in,out) so forward is x @ W + b; b:(1,out)."""
    dims = [state_size, 256, 128, 128, 64, action_size]
    params = []
    for i in range(len(dims) - 1):
        fan_in, fan_out = dims[i], dims[i + 1]
        key, kw, kb = jax.random.split(key, 3)
        bound = 1.0 / jnp.sqrt(jnp.float32(fan_in))
        w = jax.random.uniform(kw, (fan_in, fan_out), jnp.float32, -bound, bound)
        b = jax.random.uniform(kb, (1, fan_out), jnp.float32, -bound, bound)
        params.append((w, b))
    return params


def pad_params_for_tpu(params):
    """Zero-pad every layer's output width to a multiple of 128 lanes (and the
    matching rows of the next layer); cast weights to bf16 for the MXU.
    Zero padding keeps the un-padded outputs exact."""
    padded = []
    row_pad = 0  # extra (zero) input rows induced by previous layer's column padding
    for (w, b) in params:
        fan_in, fan_out = w.shape
        out_p = _round_up(fan_out, LANE)
        w_p = jnp.pad(w, ((0, row_pad), (0, out_p - fan_out)))
        b_p = jnp.pad(b, ((0, 0), (0, out_p - fan_out)))
        padded.append((w_p.astype(jnp.bfloat16), b_p.astype(jnp.float32)))
        row_pad = out_p - fan_out
    return padded


# -----------------------------------------------------------------------------
# Batch-tile selection (perf review: big tiles, low padding waste, >=2 grid steps)
# -----------------------------------------------------------------------------
def _choose_batch_tile(batch, max_tb=1024):
    max_tb = max(SUBLANE, _round_up(max_tb, SUBLANE))
    n_tiles = pl.cdiv(batch, max_tb)
    if batch >= 2 * SUBLANE:
        n_tiles = max(n_tiles, 2)        # >=2 grid steps -> both v7x TCs get work
    tb = _round_up(pl.cdiv(batch, n_tiles), SUBLANE)
    # Snap up to a multiple of 256 (native MXU M tile on v6e/v7x) only when the
    # extra batch padding this introduces stays small.
    tb_snap = min(_round_up(tb, 256), max_tb)
    if tb_snap > tb:
        extra = _round_up(batch, tb_snap) - _round_up(batch, tb)
        if extra <= max(batch // 8, SUBLANE):
            tb = tb_snap
    return tb


# -----------------------------------------------------------------------------
# Wrapper
# -----------------------------------------------------------------------------
def dqn_forward(x, padded_params, action_size, *, max_tb=1024,
                single_buffer_weights=True):
    """x: (batch, state_size), ideally already bf16 (states stored bf16 upstream).
    padded_params: output of pad_params_for_tpu. Returns (batch, action_size) bf16."""
    batch, state_size = x.shape
    out_width = padded_params[-1][0].shape[1]        # 128 (lane-dense padded)

    if x.dtype != jnp.bfloat16:
        # Prefer producing/storing states in bf16 upstream; cast as a fallback.
        x = x.astype(jnp.bfloat16)

    tb = _choose_batch_tile(batch, max_tb)
    padded_batch = _round_up(batch, tb)
    if padded_batch != batch:
        x = jnp.pad(x, ((0, padded_batch - batch), (0, 0)))

    def run(single_buffer):
        def w_spec(shape):
            # Constant block index -> operand stays VMEM-resident across steps.
            if single_buffer:
                return pl.BlockSpec(shape, lambda i: (0, 0),
                                    pipeline_mode=pl.Buffered(1))
            return pl.BlockSpec(shape, lambda i: (0, 0))

        flat_args = [x]
        # NOTE: state_size (K) intentionally NOT lane-padded; MXU pads K internally.
        in_specs = [pl.BlockSpec((tb, state_size), lambda i: (i, 0))]
        for (w, b) in padded_params:
            flat_args.extend([w, b])
            in_specs.append(w_spec(w.shape))
            in_specs.append(w_spec(b.shape))

        return pl.pallas_call(
            dqn_kernel,
            out_shape=jax.ShapeDtypeStruct((padded_batch, out_width), jnp.bfloat16),
            grid=(padded_batch // tb,),
            in_specs=in_specs,
            out_specs=pl.BlockSpec((tb, out_width), lambda i: (i, 0)),
            compiler_params=pltpu.CompilerParams(
                dimension_semantics=("parallel",),   # batch tiles shard across TCs
                vmem_limit_bytes=32 * 1024 * 1024,   # ~5 MiB needed at tb=1024 (bf16)
            ),
        )(*flat_args)

    if single_buffer_weights:
        try:
            out = run(True)
        except Exception:
            # Fallback if this JAX build rejects pipeline_mode=pl.Buffered(1) on
            # resident operands; default double-buffering is still correct.
            out = run(False)
    else:
        out = run(False)

    return out[:batch, :action_size]


# -----------------------------------------------------------------------------
# References
# -----------------------------------------------------------------------------
def reference_forward_f32(x, params):
    h = x.astype(jnp.float32)
    for i, (w, b) in enumerate(params):
        h = jnp.dot(h, w, precision=jax.lax.Precision.HIGHEST) + b
        if i < len(params) - 1:
            h = jnp.maximum(h, 0.0)
    return h


def reference_forward_kernel_numerics(x, params):
    """Emulates the kernel's numerics: bf16 MXU inputs, f32 accumulation +
    bias + ReLU, bf16 activation storage, bf16 output."""
    h = x.astype(jnp.bfloat16)
    acc = None
    for i, (w, b) in enumerate(params):
        acc = jnp.dot(h, w.astype(jnp.bfloat16),
                      preferred_element_type=jnp.float32) + b.astype(jnp.float32)
        if i < len(params) - 1:
            h = jnp.maximum(acc, 0.0).astype(jnp.bfloat16)
    return acc.astype(jnp.bfloat16)


if __name__ == "__main__":
    key = jax.random.PRNGKey(0)
    state_size = 32
    action_size = 8
    batch = 8

    k_params, k_x = jax.random.split(key)
    params = init_params(k_params, state_size, action_size)
    x = jax.random.normal(k_x, (batch, state_size), dtype=jnp.float32)

    padded_params = pad_params_for_tpu(params)
    x_bf16 = x.astype(jnp.bfloat16)     # states kept in bf16 upstream (perf review)

    q = dqn_forward(x_bf16, padded_params, action_size)
    q = jax.block_until_ready(q)

    assert q.shape == (batch, action_size)
    assert q.dtype == jnp.bfloat16

    q_f32 = q.astype(jnp.float32)
    ref_kernel = reference_forward_kernel_numerics(x_bf16, params).astype(jnp.float32)
    ref_f32 = reference_forward_f32(x, params)

    assert jnp.allclose(q_f32, ref_kernel, atol=2e-2, rtol=2e-2), \
        "mismatch vs bf16-kernel-numerics reference"
    assert jnp.allclose(q_f32, ref_f32, atol=7e-2, rtol=7e-2), \
        "mismatch vs f32 reference"

    print("KERNEL_OK")
</pallas_src>

<mosaic_0001>
module attributes {stable_mosaic.version = 11 : i64} {
  func.func @dqn_kernel(%arg0: i32, %arg1: memref<16x32xbf16, #tpu.memory_space<vmem>>, %arg2: memref<32x256xbf16, #tpu.memory_space<vmem>>, %arg3: memref<1x256xf32, #tpu.memory_space<vmem>>, %arg4: memref<256x128xbf16, #tpu.memory_space<vmem>>, %arg5: memref<1x128xf32, #tpu.memory_space<vmem>>, %arg6: memref<128x128xbf16, #tpu.memory_space<vmem>>, %arg7: memref<1x128xf32, #tpu.memory_space<vmem>>, %arg8: memref<128x128xbf16, #tpu.memory_space<vmem>>, %arg9: memref<1x128xf32, #tpu.memory_space<vmem>>, %arg10: memref<128x128xbf16, #tpu.memory_space<vmem>>, %arg11: memref<1x128xf32, #tpu.memory_space<vmem>>, %arg12: memref<16x128xbf16, #tpu.memory_space<vmem>>) attributes {dimension_semantics = [#tpu.dimension_semantics<parallel>], iteration_bounds = array<i64: 1>, scalar_prefetch = 0 : i64, scratch_operands = 0 : i64, tpu.core_type = #tpu.core_type<tc>, window_params = [{transform_indices = @transform_0, window_bounds = array<i64: 16, 32>}, {pipeline_mode = #tpu.pipeline_mode<synchronous>, transform_indices = @transform_1, window_bounds = array<i64: 32, 256>}, {pipeline_mode = #tpu.pipeline_mode<synchronous>, transform_indices = @transform_2, window_bounds = array<i64: 1, 256>}, {pipeline_mode = #tpu.pipeline_mode<synchronous>, transform_indices = @transform_3, window_bounds = array<i64: 256, 128>}, {pipeline_mode = #tpu.pipeline_mode<synchronous>, transform_indices = @transform_4, window_bounds = array<i64: 1, 128>}, {pipeline_mode = #tpu.pipeline_mode<synchronous>, transform_indices = @transform_5, window_bounds = array<i64: 128, 128>}, {pipeline_mode = #tpu.pipeline_mode<synchronous>, transform_indices = @transform_6, window_bounds = array<i64: 1, 128>}, {pipeline_mode = #tpu.pipeline_mode<synchronous>, transform_indices = @transform_7, window_bounds = array<i64: 128, 128>}, {pipeline_mode = #tpu.pipeline_mode<synchronous>, transform_indices = @transform_8, window_bounds = array<i64: 1, 128>}, {pipeline_mode = #tpu.pipeline_mode<synchronous>, transform_indices = @transform_9, window_bounds = array<i64: 128, 128>}, {pipeline_mode = #tpu.pipeline_mode<synchronous>, transform_indices = @transform_10, window_bounds = array<i64: 1, 128>}, {transform_indices = @transform_11, window_bounds = array<i64: 16, 128>}]} {
    %c0 = arith.constant 0 : index
    %c0_0 = arith.constant 0 : index
    %0 = vector.load %arg1[%c0, %c0_0] : memref<16x32xbf16, #tpu.memory_space<vmem>>, vector<16x32xbf16>
    %c0_1 = arith.constant 0 : index
    %c0_2 = arith.constant 0 : index
    %1 = vector.load %arg2[%c0_1, %c0_2] : memref<32x256xbf16, #tpu.memory_space<vmem>>, vector<32x256xbf16>
    %cst = arith.constant dense<0.000000e+00> : vector<16x256xf32>
    %2 = tpu.matmul %0, %1, %cst {dimension_numbers = #tpu.dot_dimension_numbers<[1], [0], [0], [1], [0, 0, 1, 1], [], []>} : vector<16x32xbf16>, vector<32x256xbf16>, vector<16x256xf32> -> vector<16x256xf32>
    %c0_3 = arith.constant 0 : index
    %c0_4 = arith.constant 0 : index
    %3 = vector.load %arg3[%c0_3, %c0_4] : memref<1x256xf32, #tpu.memory_space<vmem>>, vector<1x256xf32>
    %4 = vector.broadcast %3 : vector<1x256xf32> to vector<16x256xf32>
    %5 = arith.addf %2, %4 : vector<16x256xf32>
    %cst_5 = arith.constant 0.000000e+00 : f32
    %6 = vector.broadcast %cst_5 : f32 to vector<16x256xf32>
    %7 = arith.maximumf %5, %6 : vector<16x256xf32>
    %8 = arith.truncf %7 : vector<16x256xf32> to vector<16x256xbf16>
    %c0_6 = arith.constant 0 : index
    %c0_7 = arith.constant 0 : index
    %9 = vector.load %arg4[%c0_6, %c0_7] : memref<256x128xbf16, #tpu.memory_space<vmem>>, vector<256x128xbf16>
    %cst_8 = arith.constant dense<0.000000e+00> : vector<16x128xf32>
    %10 = tpu.matmul %8, %9, %cst_8 {dimension_numbers = #tpu.dot_dimension_numbers<[1], [0], [0], [1], [0, 0, 1, 1], [], []>} : vector<16x256xbf16>, vector<256x128xbf16>, vector<16x128xf32> -> vector<16x128xf32>
    %c0_9 = arith.constant 0 : index
    %c0_10 = arith.constant 0 : index
    %11 = vector.load %arg5[%c0_9, %c0_10] : memref<1x128xf32, #tpu.memory_space<vmem>>, vector<1x128xf32>
    %12 = vector.broadcast %11 : vector<1x128xf32> to vector<16x128xf32>
    %13 = arith.addf %10, %12 : vector<16x128xf32>
    %cst_11 = arith.constant 0.000000e+00 : f32
    %14 = vector.broadcast %cst_11 : f32 to vector<16x128xf32>
    %15 = arith.maximumf %13, %14 : vector<16x128xf32>
    %16 = arith.truncf %15 : vector<16x128xf32> to vector<16x128xbf16>
    %c0_12 = arith.constant 0 : index
    %c0_13 = arith.constant 0 : index
    %17 = vector.load %arg6[%c0_12, %c0_13] : memref<128x128xbf16, #tpu.memory_space<vmem>>, vector<128x128xbf16>
    %cst_14 = arith.constant dense<0.000000e+00> : vector<16x128xf32>
    %18 = tpu.matmul %16, %17, %cst_14 {dimension_numbers = #tpu.dot_dimension_numbers<[1], [0], [0], [1], [0, 0, 1, 1], [], []>} : vector<16x128xbf16>, vector<128x128xbf16>, vector<16x128xf32> -> vector<16x128xf32>
    %c0_15 = arith.constant 0 : index
    %c0_16 = arith.constant 0 : index
    %19 = vector.load %arg7[%c0_15, %c0_16] : memref<1x128xf32, #tpu.memory_space<vmem>>, vector<1x128xf32>
    %20 = vector.broadcast %19 : vector<1x128xf32> to vector<16x128xf32>
    %21 = arith.addf %18, %20 : vector<16x128xf32>
    %cst_17 = arith.constant 0.000000e+00 : f32
    %22 = vector.broadcast %cst_17 : f32 to vector<16x128xf32>
    %23 = arith.maximumf %21, %22 : vector<16x128xf32>
    %24 = arith.truncf %23 : vector<16x128xf32> to vector<16x128xbf16>
    %c0_18 = arith.constant 0 : index
    %c0_19 = arith.constant 0 : index
    %25 = vector.load %arg8[%c0_18, %c0_19] : memref<128x128xbf16, #tpu.memory_space<vmem>>, vector<128x128xbf16>
    %cst_20 = arith.constant dense<0.000000e+00> : vector<16x128xf32>
    %26 = tpu.matmul %24, %25, %cst_20 {dimension_numbers = #tpu.dot_dimension_numbers<[1], [0], [0], [1], [0, 0, 1, 1], [], []>} : vector<16x128xbf16>, vector<128x128xbf16>, vector<16x128xf32> -> vector<16x128xf32>
    %c0_21 = arith.constant 0 : index
    %c0_22 = arith.constant 0 : index
    %27 = vector.load %arg9[%c0_21, %c0_22] : memref<1x128xf32, #tpu.memory_space<vmem>>, vector<1x128xf32>
    %28 = vector.broadcast %27 : vector<1x128xf32> to vector<16x128xf32>
    %29 = arith.addf %26, %28 : vector<16x128xf32>
    %cst_23 = arith.constant 0.000000e+00 : f32
    %30 = vector.broadcast %cst_23 : f32 to vector<16x128xf32>
    %31 = arith.maximumf %29, %30 : vector<16x128xf32>
    %32 = arith.truncf %31 : vector<16x128xf32> to vector<16x128xbf16>
    %c0_24 = arith.constant 0 : index
    %c0_25 = arith.constant 0 : index
    %33 = vector.load %arg10[%c0_24, %c0_25] : memref<128x128xbf16, #tpu.memory_space<vmem>>, vector<128x128xbf16>
    %cst_26 = arith.constant dense<0.000000e+00> : vector<16x128xf32>
    %34 = tpu.matmul %32, %33, %cst_26 {dimension_numbers = #tpu.dot_dimension_numbers<[1], [0], [0], [1], [0, 0, 1, 1], [], []>} : vector<16x128xbf16>, vector<128x128xbf16>, vector<16x128xf32> -> vector<16x128xf32>
    %c0_27 = arith.constant 0 : index
    %c0_28 = arith.constant 0 : index
    %35 = vector.load %arg11[%c0_27, %c0_28] : memref<1x128xf32, #tpu.memory_space<vmem>>, vector<1x128xf32>
    %36 = vector.broadcast %35 : vector<1x128xf32> to vector<16x128xf32>
    %37 = arith.addf %34, %36 : vector<16x128xf32>
    %38 = arith.truncf %37 : vector<16x128xf32> to vector<16x128xbf16>
    %c0_29 = arith.constant 0 : index
    %c0_30 = arith.constant 0 : index
    %39 = vector.load %arg12[%c0_29, %c0_30] : memref<16x128xbf16, #tpu.memory_space<vmem>>, vector<16x128xbf16>
    tpu.vector_store %arg12[%c0_29, %c0_30], %38 {strides = array<i32>} : memref<16x128xbf16, #tpu.memory_space<vmem>>, vector<16x128xbf16>,
    return
  }
  func.func @transform_0(%arg0: i32) -> (i32, i32) {
    %c0_i32 = arith.constant 0 : i32
    %c0_i32_0 = arith.constant 0 : i32
    return %arg0, %c0_i32 : i32, i32
  }
  func.func @transform_1(%arg0: i32) -> (i32, i32) {
    %c0_i32 = arith.constant 0 : i32
    %c0_i32_0 = arith.constant 0 : i32
    %c0_i32_1 = arith.constant 0 : i32
    return %c0_i32, %c0_i32_0 : i32, i32
  }
  func.func @transform_2(%arg0: i32) -> (i32, i32) {
    %c0_i32 = arith.constant 0 : i32
    %c0_i32_0 = arith.constant 0 : i32
    %c0_i32_1 = arith.constant 0 : i32
    return %c0_i32, %c0_i32_0 : i32, i32
  }
  func.func @transform_3(%arg0: i32) -> (i32, i32) {
    %c0_i32 = arith.constant 0 : i32
    %c0_i32_0 = arith.constant 0 : i32
    %c0_i32_1 = arith.constant 0 : i32
    return %c0_i32, %c0_i32_0 : i32, i32
  }
  func.func @transform_4(%arg0: i32) -> (i32, i32) {
    %c0_i32 = arith.constant 0 : i32
    %c0_i32_0 = arith.constant 0 : i32
    %c0_i32_1 = arith.constant 0 : i32
    return %c0_i32, %c0_i32_0 : i32, i32
  }
  func.func @transform_5(%arg0: i32) -> (i32, i32) {
    %c0_i32 = arith.constant 0 : i32
    %c0_i32_0 = arith.constant 0 : i32
    %c0_i32_1 = arith.constant 0 : i32
    return %c0_i32, %c0_i32_0 : i32, i32
  }
  func.func @transform_6(%arg0: i32) -> (i32, i32) {
    %c0_i32 = arith.constant 0 : i32
    %c0_i32_0 = arith.constant 0 : i32
    %c0_i32_1 = arith.constant 0 : i32
    return %c0_i32, %c0_i32_0 : i32, i32
  }
  func.func @transform_7(%arg0: i32) -> (i32, i32) {
    %c0_i32 = arith.constant 0 : i32
    %c0_i32_0 = arith.constant 0 : i32
    %c0_i32_1 = arith.constant 0 : i32
    return %c0_i32, %c0_i32_0 : i32, i32
  }
  func.func @transform_8(%arg0: i32) -> (i32, i32) {
    %c0_i32 = arith.constant 0 : i32
    %c0_i32_0 = arith.constant 0 : i32
    %c0_i32_1 = arith.constant 0 : i32
    return %c0_i32, %c0_i32_0 : i32, i32
  }
  func.func @transform_9(%arg0: i32) -> (i32, i32) {
    %c0_i32 = arith.constant 0 : i32
    %c0_i32_0 = arith.constant 0 : i32
    %c0_i32_1 = arith.constant 0 : i32
    return %c0_i32, %c0_i32_0 : i32, i32
  }
  func.func @transform_10(%arg0: i32) -> (i32, i32) {
    %c0_i32 = arith.constant 0 : i32
    %c0_i32_0 = arith.constant 0 : i32
    %c0_i32_1 = arith.constant 0 : i32
    return %c0_i32, %c0_i32_0 : i32, i32
  }
  func.func @transform_11(%arg0: i32) -> (i32, i32) {
    %c0_i32 = arith.constant 0 : i32
    %c0_i32_0 = arith.constant 0 : i32
    return %arg0, %c0_i32 : i32, i32
  }
}

module attributes {stable_mosaic.version = 11 : i64} {
  func.func @dqn_kernel(%arg0: i32, %arg1: memref<16x32xbf16, #tpu.memory_space<vmem>>, %arg2: memref<32x256xbf16, #tpu.memory_space<vmem>>, %arg3: memref<1x256xf32, #tpu.memory_space<vmem>>, %arg4: memref<256x128xbf16, #tpu.memory_space<vmem>>, %arg5: memref<1x128xf32, #tpu.memory_space<vmem>>, %arg6: memref<128x128xbf16, #tpu.memory_space<vmem>>, %arg7: memref<1x128xf32, #tpu.memory_space<vmem>>, %arg8: memref<128x128xbf16, #tpu.memory_space<vmem>>, %arg9: memref<1x128xf32, #tpu.memory_space<vmem>>, %arg10: memref<128x128xbf16, #tpu.memory_space<vmem>>, %arg11: memref<1x128xf32, #tpu.memory_space<vmem>>, %arg12: memref<16x128xbf16, #tpu.memory_space<vmem>>) attributes {dimension_semantics = [#tpu.dimension_semantics<parallel>], iteration_bounds = array<i64: 1>, scalar_prefetch = 0 : i64, scratch_operands = 0 : i64, tpu.core_type = #tpu.core_type<tc>, window_params = [{transform_indices = @transform_0, window_bounds = array<i64: 16, 32>}, {pipeline_mode = #tpu.pipeline_mode<synchronous>, transform_indices = @transform_1, window_bounds = array<i64: 32, 256>}, {pipeline_mode = #tpu.pipeline_mode<synchronous>, transform_indices = @transform_2, window_bounds = array<i64: 1, 256>}, {pipeline_mode = #tpu.pipeline_mode<synchronous>, transform_indices = @transform_3, window_bounds = array<i64: 256, 128>}, {pipeline_mode = #tpu.pipeline_mode<synchronous>, transform_indices = @transform_4, window_bounds = array<i64: 1, 128>}, {pipeline_mode = #tpu.pipeline_mode<synchronous>, transform_indices = @transform_5, window_bounds = array<i64: 128, 128>}, {pipeline_mode = #tpu.pipeline_mode<synchronous>, transform_indices = @transform_6, window_bounds = array<i64: 1, 128>}, {pipeline_mode = #tpu.pipeline_mode<synchronous>, transform_indices = @transform_7, window_bounds = array<i64: 128, 128>}, {pipeline_mode = #tpu.pipeline_mode<synchronous>, transform_indices = @transform_8, window_bounds = array<i64: 1, 128>}, {pipeline_mode = #tpu.pipeline_mode<synchronous>, transform_indices = @transform_9, window_bounds = array<i64: 128, 128>}, {pipeline_mode = #tpu.pipeline_mode<synchronous>, transform_indices = @transform_10, window_bounds = array<i64: 1, 128>}, {transform_indices = @transform_11, window_bounds = array<i64: 16, 128>}]} {
    %c0 = arith.constant 0 : index
    %c0_0 = arith.constant 0 : index
    %0 = vector.load %arg1[%c0, %c0_0] : memref<16x32xbf16, #tpu.memory_space<vmem>>, vector<16x32xbf16>
    %c0_1 = arith.constant 0 : index
    %c0_2 = arith.constant 0 : index
    %1 = vector.load %arg2[%c0_1, %c0_2] : memref<32x256xbf16, #tpu.memory_space<vmem>>, vector<32x256xbf16>
    %cst = arith.constant dense<0.000000e+00> : vector<16x256xf32>
    %2 = tpu.matmul %0, %1, %cst {dimension_numbers = #tpu.dot_dimension_numbers<[1], [0], [0], [1], [0, 0, 1, 1], [], []>} : vector<16x32xbf16>, vector<32x256xbf16>, vector<16x256xf32> -> vector<16x256xf32>
    %c0_3 = arith.constant 0 : index
    %c0_4 = arith.constant 0 : index
    %3 = vector.load %arg3[%c0_3, %c0_4] : memref<1x256xf32, #tpu.memory_space<vmem>>, vector<1x256xf32>
    %4 = vector.broadcast %3 : vector<1x256xf32> to vector<16x256xf32>
    %5 = arith.addf %2, %4 : vector<16x256xf32>
    %cst_5 = arith.constant 0.000000e+00 : f32
    %6 = vector.broadcast %cst_5 : f32 to vector<16x256xf32>
    %7 = arith.maximumf %5, %6 : vector<16x256xf32>
    %8 = arith.truncf %7 : vector<16x256xf32> to vector<16x256xbf16>
    %c0_6 = arith.constant 0 : index
    %c0_7 = arith.constant 0 : index
    %9 = vector.load %arg4[%c0_6, %c0_7] : memref<256x128xbf16, #tpu.memory_space<vmem>>, vector<256x128xbf16>
    %cst_8 = arith.constant dense<0.000000e+00> : vector<16x128xf32>
    %10 = tpu.matmul %8, %9, %cst_8 {dimension_numbers = #tpu.dot_dimension_numbers<[1], [0], [0], [1], [0, 0, 1, 1], [], []>} : vector<16x256xbf16>, vector<256x128xbf16>, vector<16x128xf32> -> vector<16x128xf32>
    %c0_9 = arith.constant 0 : index
    %c0_10 = arith.constant 0 : index
    %11 = vector.load %arg5[%c0_9, %c0_10] : memref<1x128xf32, #tpu.memory_space<vmem>>, vector<1x128xf32>
    %12 = vector.broadcast %11 : vector<1x128xf32> to vector<16x128xf32>
    %13 = arith.addf %10, %12 : vector<16x128xf32>
    %cst_11 = arith.constant 0.000000e+00 : f32
    %14 = vector.broadcast %cst_11 : f32 to vector<16x128xf32>
    %15 = arith.maximumf %13, %14 : vector<16x128xf32>
    %16 = arith.truncf %15 : vector<16x128xf32> to vector<16x128xbf16>
    %c0_12 = arith.constant 0 : index
    %c0_13 = arith.constant 0 : index
    %17 = vector.load %arg6[%c0_12, %c0_13] : memref<128x128xbf16, #tpu.memory_space<vmem>>, vector<128x128xbf16>
    %cst_14 = arith.constant dense<0.000000e+00> : vector<16x128xf32>
    %18 = tpu.matmul %16, %17, %cst_14 {dimension_numbers = #tpu.dot_dimension_numbers<[1], [0], [0], [1], [0, 0, 1, 1], [], []>} : vector<16x128xbf16>, vector<128x128xbf16>, vector<16x128xf32> -> vector<16x128xf32>
    %c0_15 = arith.constant 0 : index
    %c0_16 = arith.constant 0 : index
    %19 = vector.load %arg7[%c0_15, %c0_16] : memref<1x128xf32, #tpu.memory_space<vmem>>, vector<1x128xf32>
    %20 = vector.broadcast %19 : vector<1x128xf32> to vector<16x128xf32>
    %21 = arith.addf %18, %20 : vector<16x128xf32>
    %cst_17 = arith.constant 0.000000e+00 : f32
    %22 = vector.broadcast %cst_17 : f32 to vector<16x128xf32>
    %23 = arith.maximumf %21, %22 : vector<16x128xf32>
    %24 = arith.truncf %23 : vector<16x128xf32> to vector<16x128xbf16>
    %c0_18 = arith.constant 0 : index
    %c0_19 = arith.constant 0 : index
    %25 = vector.load %arg8[%c0_18, %c0_19] : memref<128x128xbf16, #tpu.memory_space<vmem>>, vector<128x128xbf16>
    %cst_20 = arith.constant dense<0.000000e+00> : vector<16x128xf32>
    %26 = tpu.matmul %24, %25, %cst_20 {dimension_numbers = #tpu.dot_dimension_numbers<[1], [0], [0], [1], [0, 0, 1, 1], [], []>} : vector<16x128xbf16>, vector<128x128xbf16>, vector<16x128xf32> -> vector<16x128xf32>
    %c0_21 = arith.constant 0 : index
    %c0_22 = arith.constant 0 : index
    %27 = vector.load %arg9[%c0_21, %c0_22] : memref<1x128xf32, #tpu.memory_space<vmem>>, vector<1x128xf32>
    %28 = vector.broadcast %27 : vector<1x128xf32> to vector<16x128xf32>
    %29 = arith.addf %26, %28 : vector<16x128xf32>
    %cst_23 = arith.constant 0.000000e+00 : f32
    %30 = vector.broadcast %cst_23 : f32 to vector<16x128xf32>
    %31 = arith.maximumf %29, %30 : vector<16x128xf32>
    %32 = arith.truncf %31 : vector<16x128xf32> to vector<16x128xbf16>
    %c0_24 = arith.constant 0 : index
    %c0_25 = arith.constant 0 : index
    %33 = vector.load %arg10[%c0_24, %c0_25] : memref<128x128xbf16, #tpu.memory_space<vmem>>, vector<128x128xbf16>
    %cst_26 = arith.constant dense<0.000000e+00> : vector<16x128xf32>
    %34 = tpu.matmul %32, %33, %cst_26 {dimension_numbers = #tpu.dot_dimension_numbers<[1], [0], [0], [1], [0, 0, 1, 1], [], []>} : vector<16x128xbf16>, vector<128x128xbf16>, vector<16x128xf32> -> vector<16x128xf32>
    %c0_27 = arith.constant 0 : index
    %c0_28 = arith.constant 0 : index
    %35 = vector.load %arg11[%c0_27, %c0_28] : memref<1x128xf32, #tpu.memory_space<vmem>>, vector<1x128xf32>
    %36 = vector.broadcast %35 : vector<1x128xf32> to vector<16x128xf32>
    %37 = arith.addf %34, %36 : vector<16x128xf32>
    %38 = arith.truncf %37 : vector<16x128xf32> to vector<16x128xbf16>
    %c0_29 = arith.constant 0 : index
    %c0_30 = arith.constant 0 : index
    %39 = vector.load %arg12[%c0_29, %c0_30] : memref<16x128xbf16, #tpu.memory_space<vmem>>, vector<16x128xbf16>
    tpu.vector_store %arg12[%c0_29, %c0_30], %38 {strides = array<i32>} : memref<16x128xbf16, #tpu.memory_space<vmem>>, vector<16x128xbf16>,
    return
  }
  func.func @transform_0(%arg0: i32) -> (i32, i32) {
    %c0_i32 = arith.constant 0 : i32
    %c0_i32_0 = arith.constant 0 : i32
    return %arg0, %c0_i32 : i32, i32
  }
  func.func @transform_1(%arg0: i32) -> (i32, i32) {
    %c0_i32 = arith.constant 0 : i32
    %c0_i32_0 = arith.constant 0 : i32
    %c0_i32_1 = arith.constant 0 : i32
    return %c0_i32, %c0_i32_0 : i32, i32
  }
  func.func @transform_2(%arg0: i32) -> (i32, i32) {
    %c0_i32 = arith.constant 0 : i32
    %c0_i32_0 = arith.constant 0 : i32
    %c0_i32_1 = arith.constant 0 : i32
    return %c0_i32, %c0_i32_0 : i32, i32
  }
  func.func @transform_3(%arg0: i32) -> (i32, i32) {
    %c0_i32 = arith.constant 0 : i32
    %c0_i32_0 = arith.constant 0 : i32
    %c0_i32_1 = arith.constant 0 : i32
    return %c0_i32, %c0_i32_0 : i32, i32
  }
  func.func @transform_4(%arg0: i32) -> (i32, i32) {
    %c0_i32 = arith.constant 0 : i32
    %c0_i32_0 = arith.constant 0 : i32
    %c0_i32_1 = arith.constant 0 : i32
    return %c0_i32, %c0_i32_0 : i32, i32
  }
  func.func @transform_5(%arg0: i32) -> (i32, i32) {
    %c0_i32 = arith.constant 0 : i32
    %c0_i32_0 = arith.constant 0 : i32
    %c0_i32_1 = arith.constant 0 : i32
    return %c0_i32, %c0_i32_0 : i32, i32
  }
  func.func @transform_6(%arg0: i32) -> (i32, i32) {
    %c0_i32 = arith.constant 0 : i32
    %c0_i32_0 = arith.constant 0 : i32
    %c0_i32_1 = arith.constant 0 : i32
    return %c0_i32, %c0_i32_0 : i32, i32
  }
  func.func @transform_7(%arg0: i32) -> (i32, i32) {
    %c0_i32 = arith.constant 0 : i32
    %c0_i32_0 = arith.constant 0 : i32
    %c0_i32_1 = arith.constant 0 : i32
    return %c0_i32, %c0_i32_0 : i32, i32
  }
  func.func @transform_8(%arg0: i32) -> (i32, i32) {
    %c0_i32 = arith.constant 0 : i32
    %c0_i32_0 = arith.constant 0 : i32
    %c0_i32_1 = arith.constant 0 : i32
    return %c0_i32, %c0_i32_0 : i32, i32
  }
  func.func @transform_9(%arg0: i32) -> (i32, i32) {
    %c0_i32 = arith.constant 0 : i32
    %c0_i32_0 = arith.constant 0 : i32
    %c0_i32_1 = arith.constant 0 : i32
    return %c0_i32, %c0_i32_0 : i32, i32
  }
  func.func @transform_10(%arg0: i32) -> (i32, i32) {
    %c0_i32 = arith.constant 0 : i32
    %c0_i32_0 = arith.constant 0 : i32
    %c0_i32_1 = arith.constant 0 : i32
    return %c0_i32, %c0_i32_0 : i32, i32
  }
  func.func @transform_11(%arg0: i32) -> (i32, i32) {
    %c0_i32 = arith.constant 0 : i32
    %c0_i32_0 = arith.constant 0 : i32
    return %arg0, %c0_i32 : i32, i32
  }
}

</mosaic_0001>

<bundles_post_ra>
// kernel: tpu_custom_call.1
= control target key start
LH: loop header
LB: loop body
LE: loop exit
PB: predicated region body
PF: predicated region fallthrough
CT: control target
= control target key end

     0   :  { %16 = vsyncpa [#allocation3], 0  ;;  %s1306_s0 = inlined_call_operand.hbm [shape: bf16[16,32], index: 0, kind: input, shape index: {}]   ;;  %s1307_s1 = inlined_call_operand.hbm [shape: bf16[32,256], index: 1, kind: input, shape index: {}]   ;;  %s1308_s2 = inlined_call_operand.vmem [shape: f32[1,256], index: 2, kind: input, shape index: {}]   ;;  %s1309_s3 = inlined_call_operand.hbm [shape: bf16[256,128], index: 3, kind: input, shape index: {}]   ;;  %s1310_s4 = inlined_call_operand.vmem [shape: f32[1,128], index: 4, kind: input, shape index: {}]   ;;  %s1311_s5 = inlined_call_operand.hbm [shape: bf16[128,128], index: 5, kind: input, shape index: {}]   ;;  %s1312_s6 = inlined_call_operand.vmem [shape: f32[1,128], index: 6, kind: input, shape index: {}]   ;;  %s1313_s7 = inlined_call_operand.hbm [shape: bf16[128,128], index: 7, kind: input, shape index: {}]   ;;  %s1314_s8 = inlined_call_operand.vmem [shape: f32[1,128], index: 8, kind: input, shape index: {}]   ;;  %s1315_s9 = inlined_call_operand.hbm [shape: bf16[128,128], index: 9, kind: input, shape index: {}]   ;;  %s1316_s10 = inlined_call_operand.vmem [shape: f32[1,128], index: 10, kind: input, shape index: {}]   ;;  %s1317_s11 = inlined_call_operand.hbm [shape: bf16[16,128], index: 11, kind: output, shape index: {}]  }
   0x1   :  { %17 = vsyncpa [#allocation6], 0 }
   0x2   :  { %18 = vsyncpa [#allocation9], 0 }
   0x3   :  { %19 = vsyncpa [#allocation12], 0 }
   0x4   :  { %20 = vsyncpa [#allocation4], 0  ;;  %s1148_s17 = smov [#allocation5]  }
   0x5   :  { %s38_s18 = sshll.u32 %s1148_s17, 4  ;;  %s39_s18 = int_to_ptr.vmem [resolvable:$true] %s38_s18 }
   0x6   :  { %s1006_s19 = scalar_lea.vmem %s39_s18, 512  ;;  %p1011_p1 = scmp.lt.s32.totalorder %s39_s18, %s39_s18 }
   0x7   :  { %p1007_p0 = scmp.ne.s32.totalorder %s39_s18, %s1006_s19  ;;  %p1012_p2 = scmp.lt.s32.totalorder %s1006_s19, %s1006_s19 }
   0x9   :  { %p1013_p3 = por %p1012_p2, %p1011_p1 }
   0xb   :  { %p1014_p4 = pnand %p1013_p3, %p1007_p0 }
   0xd   :  { %1017 = shalt.err (!%p1014_p4)
}
   0xe   :  { %s1149_s20 = smov 128   ;;  %s1150_s21 = smov 8  }
   0xf   :  { %44 = dma.hbm_to_vmem [thread:$0]  %s1307_s1, 512, %s39_s18, [#allocation6], %s1149_s20, %s1149_s20, %s1150_s21  }
  0x10   :  { %s1151_s24 = smov [#allocation8]   ;;  %s1152_s26 = smov [#allocation2]  }
  0x11   :  { %s66_s25 = sshll.u32 %s1151_s24, 4  ;;  %s26_s27 = sshll.u32 %s1152_s26, 4  ;;  %s67_s25 = int_to_ptr.vmem [resolvable:$true] %s66_s25  ;;  %s27_s27 = int_to_ptr.vmem [resolvable:$true] %s26_s27 }
  0x12   :  { %s1026_s28 = scalar_lea.vmem %s67_s25, 1024  ;;  %p1031_p6 = scmp.lt.s32.totalorder %s67_s25, %s67_s25 }
  0x13   :  { %p1027_p5 = scmp.ne.s32.totalorder %s67_s25, %s1026_s28  ;;  %p1032_p7 = scmp.lt.s32.totalorder %s1026_s28, %s1026_s28 }
  0x15   :  { %p1033_p8 = por %p1032_p7, %p1031_p6 }
  0x17   :  { %p1034_p9 = pnand %p1033_p8, %p1027_p5 }
  0x19   :  { %1037 = shalt.err (!%p1034_p9)
}
  0x1a   :  { %s1153_s29 = smov 64   ;;  %s1154_s30 = smov 4  }
  0x1b   :  { %72 = dma.hbm_to_vmem [thread:$0]  %s1311_s5, 1024, %s67_s25, [#allocation9], %s1153_s29, %s1153_s29, %s1154_s30  }
  0x1c   :  { %s1046_s1 = scalar_lea.vmem %s27_s27, 128  ;;  %p1051_p11 = scmp.lt.s32.totalorder %s27_s27, %s27_s27 }
  0x1d   :  { %p1047_p10 = scmp.ne.s32.totalorder %s27_s27, %s1046_s1  ;;  %p1052_p12 = scmp.lt.s32.totalorder %s1046_s1, %s1046_s1 }
  0x1f   :  { %p1053_p13 = por %p1052_p12, %p1051_p11 }
  0x21   :  { %p1054_p0 = pnand %p1053_p13, %p1047_p10 }
  0x23   :  { %1057 = shalt.err (!%p1054_p0)
}
  0x24   :  { %32 = dma.hbm_to_vmem [thread:$0]  %s1306_s0, 128, %s27_s27, [#allocation3], %s1153_s29, %s1153_s29, %s1154_s30  }
  0x25   :  { %s1155_s16 = smov [#allocation7]   ;;  %s1156_s18 = smov [#allocation10]  }
  0x26   :  { %s52_s17 = sshll.u32 %s1155_s16, 4  ;;  %s80_s5 = sshll.u32 %s1156_s18, 4  ;;  %s53_s17 = int_to_ptr.vmem [resolvable:$true] %s52_s17  ;;  %s81_s5 = int_to_ptr.vmem [resolvable:$true] %s80_s5 }
  0x27   :  { %s1066_s19 = scalar_lea.vmem %s53_s17, 2048  ;;  %p1071_p2 = scmp.lt.s32.totalorder %s53_s17, %s53_s17 }
  0x28   :  { %p1067_p1 = scmp.ne.s32.totalorder %s53_s17, %s1066_s19  ;;  %p1072_p3 = scmp.lt.s32.totalorder %s1066_s19, %s1066_s19 }
  0x2a   :  { %p1073_p4 = por %p1072_p3, %p1071_p2 }
  0x2c   :  { %p1074_p5 = pnand %p1073_p4, %p1067_p1 }
  0x2e   :  { %1077 = shalt.err (!%p1074_p5)
}
  0x2f   :  { %58 = dma.hbm_to_vmem [thread:$0]  %s1309_s3, 2048, %s53_s17, [#allocation6], %s1153_s29, %s1153_s29, %s1154_s30  }
  0x30   :  { %s1086_s0 = scalar_lea.vmem %s81_s5, 1024  ;;  %p1091_p7 = scmp.lt.s32.totalorder %s81_s5, %s81_s5 }
  0x31   :  { %p1087_p6 = scmp.ne.s32.totalorder %s81_s5, %s1086_s0  ;;  %p1092_p8 = scmp.lt.s32.totalorder %s1086_s0, %s1086_s0 }
  0x33   :  { %p1093_p9 = por %p1092_p8, %p1091_p7 }
  0x35   :  { %p1094_p10 = pnand %p1093_p9, %p1087_p6 }
  0x37   :  { %1097 = shalt.err (!%p1094_p10)
}
  0x38   :  { %86 = dma.hbm_to_vmem [thread:$0]  %s1313_s7, 1024, %s81_s5, [#allocation9], %s1153_s29, %s1153_s29, %s1154_s30  }
  0x39   :  { %s1157_s24 = smov [#allocation11]  }
  0x3a   :  { %s94_s25 = sshll.u32 %s1157_s24, 4  ;;  %s95_s25 = int_to_ptr.vmem [resolvable:$true] %s94_s25 }
  0x3b   :  { %s1106_s26 = scalar_lea.vmem %s95_s25, 1024  ;;  %p1111_p12 = scmp.lt.s32.totalorder %s95_s25, %s95_s25 }
  0x3c   :  { %p1107_p11 = scmp.ne.s32.totalorder %s95_s25, %s1106_s26  ;;  %p1112_p13 = scmp.lt.s32.totalorder %s1106_s26, %s1106_s26 }
  0x3e   :  { %p1113_p0 = por %p1112_p13, %p1111_p12 }
  0x40   :  { %p1114_p1 = pnand %p1113_p0, %p1107_p11 }
  0x42   :  { %1117 = shalt.err (!%p1114_p1)
}
  0x43   :  { %100 = dma.hbm_to_vmem [thread:$0]  %s1315_s9, 1024, %s95_s25, [#allocation12], %s1153_s29, %s1153_s29, %s1154_s30  }
  0x44   :  { %1138 = dma.done.wait [#allocation3], 128  }
  0x45   :  { %1139 = vsyncadd [#allocation3], 4294967168 }
  0x46   :  { %1140 = dma.done.wait [#allocation6], 2560  }
  0x47   :  { %1141 = vsyncadd [#allocation6], 4294964736 }
  0x48   :  { %1142 = dma.done.wait [#allocation9], 2048  }
  0x49   :  { %1143 = vsyncadd [#allocation9], 4294965248 }
  0x4a   :  { %1144 = dma.done.wait [#allocation12], 1024  }
  0x4b   :  { %1145 = vsyncadd [#allocation12], 4294966272  ;;  %v1158_v0 = vmov 0   ;;  %v951_v1 = vld [vmem:[#allocation5 + $0x14] ss:$8 sps:$4 sm:$0xff]   ;;  %vm165_vm0 = vcmask 261120   ;;  %v130_v27 = vlaneseq }
  0x4c   :  { %201 = vmatprep.mubr.bf16.mxu0 %v1158_v0  ;;  %v953_v2 = vld [vmem:[#allocation5 + $0x10] ss:$8 sps:$4 sm:$0xff]   ;;  %181 = vmatprep.subr.bf16.mxu0 %v951_v1  ;;  %v954_v3 = vld [vmem:[#allocation5 + $0x4] ss:$8 sps:$4 sm:$0xff]   ;;  %v956_v4 = vld [vmem:[#allocation5] ss:$8 sps:$4 sm:$0xff]  }
  0x4d   :  { %182 = vmatpush1.bf16.msra.mxu0 %v953_v2  ;;  %v957_v5 = vld [vmem:[#allocation2] sm:$0xff]   ;;  %v960_v8 = vld [vmem:[#allocation7 + $0x70] sm:$0xff]   ;;  %v962_v10 = vld [vmem:[#allocation7 + $0x68] sm:$0xff]   ;;  %v1159_v23 = vmov 0.0   ;;  %v131_v28 = vshrl.u32 %v130_v27, 7  ;;  %vm1160_vm1 = vmmov 0  }
  0x4e   :  { %183 = vmatprep.subr.bf16.mxu0 %v954_v3  ;;  %v958_v6 = vld [vmem:[#allocation7 + $0x78] sm:$0xff]   ;;  %v961_v9 = vld [vmem:[#allocation7 + $0x30] sm:$0xff]   ;;  %v963_v11 = vld [vmem:[#allocation7 + $0x28] sm:$0xff]   ;;  %s1161_s15 = smov [#allocation13]  }
  0x4f   :  { %v959_v7 = vld [vmem:[#allocation7 + $0x38] sm:$0xff]   ;;  %828 = vmatprep.subr.bf16.mxu1 %v958_v6  ;;  %v964_v12 = vld [vmem:[#allocation7 + $0x60] sm:$0xff]   ;;  %v968_v16 = vld [vmem:[#allocation7 + $0x50] sm:$0xff]   ;;  %v136_v29 = vsub.s32 1, %v131_v28  ;;  %v132_v30 = vsub.s32 0, %v131_v28  ;;  %s754_s16 = sshll.u32 %s1161_s15, 4  ;;  %s755_s16 = int_to_ptr.vmem [resolvable:$true] %s754_s16 }
  0x50   :  { %829 = vmatpush3.bf16.msra.mxu1 %v959_v7  ;;  %v965_v13 = vld [vmem:[#allocation7 + $0x20] sm:$0xff]   ;;  %v966_v14 = vld [vmem:[#allocation7 + $0x58] sm:$0xff]   ;;  %v969_v17 = vld [vmem:[#allocation7 + $0x10] sm:$0xff]   ;;  %p1123_p3 = scmp.lt.s32.totalorder %s755_s16, %s755_s16 }
  0x51   :  { %184 = vmatpush1.bf16.msra.mxu0 %v956_v4  ;;  %830 = vmatprep.subr.bf16.mxu1 %v960_v8  ;;  %v967_v15 = vld [vmem:[#allocation7 + $0x18] sm:$0xff]   ;;  %v970_v18 = vld [vmem:[#allocation7 + $0x48] sm:$0xff]   ;;  %v972_v20 = vld [vmem:[#allocation7 + $0x40] sm:$0xff]  }
  0x52   :  { %v971_v19 = vld [vmem:[#allocation7 + $0x8] sm:$0xff]   ;;  %v973_v21 = vld [vmem:[#allocation7] sm:$0xff]   ;;  %v974_v22 = vld [vmem:[#allocation8 + $0x38] sm:$0xff]   ;;  %877 = vmatprep.subr.bf16.mxu0 %v1159_v23 }
  0x53   :  { %v975_v24 = vld [vmem:[#allocation8 + $0x30] sm:$0xff]   ;;  %v976_v25 = vld [vmem:[#allocation8 + $0x28] sm:$0xff]   ;;  %v977_v26 = vld [vmem:[#allocation8 + $0x20] sm:$0xff]  }
  0x54   :  { %774 = vmatmul.mubr.msk.bf16.vlgmr.msra.gmra.mxu0 %vm165_vm0, %v957_v5  ;;  %831 = vmatpush3.bf16.msra.mxu1 %v961_v9  ;;  %v128_v31 = vld [vmem:[%s1308_s2] sm:$0x3]  ;;  %v979_v49 = vld [vmem:[#allocation8 + $0x10] sm:$0xff]   ;;  %v980_v50 = vld [vmem:[#allocation8 + $0x8] sm:$0xff]  }
  0x55   :  { %832 = vmatprep.subr.bf16.mxu1 %v962_v10  ;;  %878 = vmatpush3.bf16.msra.mxu0 %v974_v22  ;;  %v137_v33 = vrot.slane %v128_v31, %v136_v29  ;;  %v133_v34 = vrot.slane %v128_v31, %v132_v30  ;;  %v978_v48 = vld [vmem:[#allocation8 + $0x18] sm:$0xff]   ;;  %v981_v51 = vld [vmem:[#allocation8] sm:$0xff]   ;;  %v983_v53 = vld [vmem:[#allocation10 + $0x30] sm:$0xff]  }
  0x56   :  { %879 = vmatprep.subr.bf16.mxu0 %v1159_v23  ;;  %893 = vmatprep.mubr.msk.bf16.mxu0 %vm1160_vm1, %v1159_v23  ;;  %v982_v52 = vld [vmem:[#allocation10 + $0x38] sm:$0xff]   ;;  %v984_v54 = vld [vmem:[#allocation10 + $0x28] sm:$0xff]   ;;  %v985_v55 = vld [vmem:[#allocation10 + $0x20] sm:$0xff]  }
  0x57   :  { %v986_v56 = vld [vmem:[#allocation10 + $0x18] sm:$0xff]   ;;  %v987_v5 = vld [vmem:[#allocation10 + $0x10] sm:$0xff]   ;;  %v988_v6 = vld [vmem:[#allocation10 + $0x8] sm:$0xff]  }
  0x58   :  { %833 = vmatpush3.bf16.msra.mxu1 %v963_v11  ;;  %v775_v60 = vld [vmem:[%s1310_s4] ss:$0 sm:$0xff]  ;;  %v989_v7 = vld [vmem:[#allocation10] sm:$0xff]   ;;  %v991_v9 = vld [vmem:[#allocation11 + $0x30] sm:$0xff]  }
  0x59   :  { %834 = vmatprep.subr.bf16.mxu1 %v964_v12  ;;  %880 = vmatpush3.bf16.msra.mxu0 %v975_v24  ;;  %v990_v8 = vld [vmem:[#allocation11 + $0x38] sm:$0xff]   ;;  %v992_v10 = vld [vmem:[#allocation11 + $0x28] sm:$0xff]   ;;  %v993_v11 = vld [vmem:[#allocation11 + $0x20] sm:$0xff]  }
  0x5a   :  { %881 = vmatprep.subr.bf16.mxu0 %v1159_v23  ;;  %v994_v12 = vld [vmem:[#allocation11 + $0x18] sm:$0xff]   ;;  %v995_v24 = vld [vmem:[#allocation11 + $0x10] sm:$0xff]  }
  0x5b   :  { %v801_v27 = vld [vmem:[%s1314_s8] ss:$0 sm:$0xff]  ;;  %s1118_s8 = scalar_lea.vmem %s755_s16, 128 }
  0x5c   :  { %835 = vmatpush3.bf16.msra.mxu1 %v965_v13  ;;  %v792_v13 = vld [vmem:[%s1312_s6] ss:$0 sm:$0xff]  ;;  %p1119_p2 = scmp.ne.s32.totalorder %s755_s16, %s1118_s8  ;;  %p1124_p4 = scmp.lt.s32.totalorder %s1118_s8, %s1118_s8 }
  0x5d   :  { %836 = vmatprep.subr.bf16.mxu1 %v966_v14  ;;  %882 = vmatpush3.bf16.msra.mxu0 %v976_v25  ;;  %v996_v25 = vld [vmem:[#allocation11 + $0x8] sm:$0xff]  }
  0x5e   :  { %883 = vmatprep.subr.bf16.mxu0 %v1159_v23  ;;  %p1125_p5 = por %p1124_p4, %p1123_p3 }
  0x60   :  { %837 = vmatpush3.bf16.msra.mxu1 %v967_v15  ;;  %p1126_p6 = pnand %p1125_p5, %p1119_p2 }
  0x61   :  { %838 = vmatprep.subr.bf16.mxu1 %v968_v16  ;;  %884 = vmatpush3.bf16.msra.mxu0 %v977_v26  ;;  %v997_v26 = vld [vmem:[#allocation11] sm:$0xff]  }
  0x62   :  { %885 = vmatprep.subr.bf16.mxu0 %v1159_v23 }
  0x64   :  { %839 = vmatpush3.bf16.msra.mxu1 %v969_v17 }
  0x65   :  { %840 = vmatprep.subr.bf16.mxu1 %v970_v18  ;;  %886 = vmatpush3.bf16.msra.mxu0 %v978_v48 }
  0x66   :  { %887 = vmatprep.subr.bf16.mxu0 %v1159_v23 }
  0x68   :  { %841 = vmatpush3.bf16.msra.mxu1 %v971_v19 }
  0x69   :  { %842 = vmatprep.subr.bf16.mxu1 %v972_v20  ;;  %888 = vmatpush3.bf16.msra.mxu0 %v979_v49 }
  0x6a   :  { %889 = vmatprep.subr.bf16.mxu0 %v1159_v23 }
  0x6c   :  { %843 = vmatpush3.bf16.msra.mxu1 %v973_v21 }
  0x6d   :  { %897 = vmatprep.subr.bf16.mxu1 %v1159_v23  ;;  %890 = vmatpush3.bf16.msra.mxu0 %v980_v50 }
  0x6e   :  { %891 = vmatprep.subr.bf16.mxu0 %v1159_v23 }
  0x71   :  { %892 = vmatpush3.bf16.msra.mxu0 %v981_v51 }
  0x72   :  { %917 = vmatprep.subr.bf16.mxu0 %v1159_v23 }
 0x114   :  { %v203_v32 = vpop.f32.mrf.mxu0 }
 0x115   :  { %v204_v39 = vadd.f32 %v203_v32, %v133_v34 }
 0x116   :  { %v205_v35 = vpop.f32.mrf.mxu0 }
 0x117   :  { %v206_v37 = vadd.f32 %v205_v35, %v137_v33  ;;  %v212_v45 = vmax.f32 %v204_v39, 0.0 }
 0x118   :  { %v207_v36 = vpop.f32.mrf.mxu0 }
 0x119   :  { %v208_v38 = vadd.f32 %v207_v36, %v133_v34  ;;  %v213_v43 = vmax.f32 %v206_v37, 0.0 }
 0x11a   :  { %v209_v40 = vpop.f32.mrf.mxu0 }
 0x11b   :  { %v210_v41 = vadd.f32 %v209_v40, %v137_v33  ;;  %v214_v42 = vmax.f32 %v208_v38, 0.0 }
 0x11d   :  { %v215_v44 = vmax.f32 %v210_v41, 0.0  ;;  %v216_v47 = vpack.c.bf16 %v214_v42, %v212_v45 }
 0x11f   :  { %v217_v46 = vpack.c.bf16 %v215_v44, %v213_v43 }
 0x121   :  { %385 = vmatprep.mubr.bf16.mxu1 %v217_v46 }
 0x122   :  { %386 = vmatmul.mubr.bf16.vlgmr.msra.gmra.mxu1 %v216_v47 }
 0x123   :  { %913 = vmatprep.mubr.msk.bf16.mxu1 %vm1160_vm1, %v1159_v23  ;;  %898 = vmatpush3.bf16.msra.mxu1 %v982_v52 }
 0x124   :  { %899 = vmatprep.subr.bf16.mxu1 %v1159_v23 }
 0x127   :  { %900 = vmatpush3.bf16.msra.mxu1 %v983_v53 }
 0x128   :  { %901 = vmatprep.subr.bf16.mxu1 %v1159_v23 }
 0x12b   :  { %902 = vmatpush3.bf16.msra.mxu1 %v984_v54 }
 0x12c   :  { %903 = vmatprep.subr.bf16.mxu1 %v1159_v23 }
 0x12f   :  { %904 = vmatpush3.bf16.msra.mxu1 %v985_v55 }
 0x130   :  { %905 = vmatprep.subr.bf16.mxu1 %v1159_v23 }
 0x133   :  { %906 = vmatpush3.bf16.msra.mxu1 %v986_v56 }
 0x134   :  { %907 = vmatprep.subr.bf16.mxu1 %v1159_v23 }
 0x137   :  { %908 = vmatpush3.bf16.msra.mxu1 %v987_v5 }
 0x138   :  { %909 = vmatprep.subr.bf16.mxu1 %v1159_v23 }
 0x13b   :  { %910 = vmatpush3.bf16.msra.mxu1 %v988_v6 }
 0x13c   :  { %911 = vmatprep.subr.bf16.mxu1 %v1159_v23 }
 0x13f   :  { %912 = vmatpush3.bf16.msra.mxu1 %v989_v7 }
 0x1e2   :  { %v844_v57 = vpop.f32.mrf.mxu1 }
 0x1e4   :  { %v845_v58 = vpop.f32.mrf.mxu1 }
 0x1e5   :  { %v846_v59 = vadd.f32 %v845_v58, %v844_v57 }
 0x1e6   :  { %v847_v61 = vpop.f32.mrf.mxu1 }
 0x1e7   :  { %v388_v63 = vadd.f32 %v846_v59, %v775_v60 }
 0x1e8   :  { %v848_v62 = vpop.f32.mrf.mxu1 }
 0x1e9   :  { %v849_v0 = vadd.f32 %v848_v62, %v847_v61  ;;  %v394_v2 = vmax.f32 %v388_v63, 0.0 }
 0x1eb   :  { %v391_v1 = vadd.f32 %v849_v0, %v775_v60 }
 0x1ed   :  { %v395_v3 = vmax.f32 %v391_v1, 0.0 }
 0x1ef   :  { %v396_v4 = vpack.c.bf16 %v395_v3, %v394_v2 }
 0x1f1   :  { %894 = vmatmul.mubr.bf16.vlgmr.msra.gmra.mxu0 %v396_v4 }
 0x1f2   :  { %933 = vmatprep.mubr.msk.bf16.mxu0 %vm1160_vm1, %v1159_v23  ;;  %918 = vmatpush3.bf16.msra.mxu0 %v990_v8 }
 0x1f3   :  { %919 = vmatprep.subr.bf16.mxu0 %v1159_v23 }
 0x1f6   :  { %920 = vmatpush3.bf16.msra.mxu0 %v991_v9 }
 0x1f7   :  { %921 = vmatprep.subr.bf16.mxu0 %v1159_v23 }
 0x1fa   :  { %922 = vmatpush3.bf16.msra.mxu0 %v992_v10 }
 0x1fb   :  { %923 = vmatprep.subr.bf16.mxu0 %v1159_v23 }
 0x1fe   :  { %924 = vmatpush3.bf16.msra.mxu0 %v993_v11 }
 0x1ff   :  { %925 = vmatprep.subr.bf16.mxu0 %v1159_v23 }
 0x202   :  { %926 = vmatpush3.bf16.msra.mxu0 %v994_v12 }
 0x203   :  { %927 = vmatprep.subr.bf16.mxu0 %v1159_v23 }
 0x206   :  { %928 = vmatpush3.bf16.msra.mxu0 %v995_v24 }
 0x207   :  { %929 = vmatprep.subr.bf16.mxu0 %v1159_v23 }
 0x20a   :  { %930 = vmatpush3.bf16.msra.mxu0 %v996_v25 }
 0x20b   :  { %931 = vmatprep.subr.bf16.mxu0 %v1159_v23  ;;  %v810_v23 = vld [vmem:[%s1316_s10] ss:$0 sm:$0xff] }
 0x20e   :  { %932 = vmatpush3.bf16.msra.mxu0 %v997_v26 }
 0x2b1   :  { %v502_v14 = vpop.f32.mrf.mxu0 }
 0x2b2   :  { %v503_v16 = vadd.f32 %v792_v13, %v502_v14 }
 0x2b3   :  { %v895_v15 = vpop.f32.mrf.mxu0 }
 0x2b4   :  { %v509_v20 = vmax.f32 %v503_v16, 0.0 }
 0x2b5   :  { %v505_v17 = vpop.f32.mrf.mxu0 }
 0x2b6   :  { %v506_v18 = vadd.f32 %v792_v13, %v505_v17 }
 0x2b7   :  { %v896_v19 = vpop.f32.mrf.mxu0 }
 0x2b8   :  { %v510_v21 = vmax.f32 %v506_v18, 0.0 }
 0x2ba   :  { %v511_v22 = vpack.c.bf16 %v510_v21, %v509_v20 }
 0x2bc   :  { %914 = vmatmul.mubr.bf16.vlgmr.msra.gmra.mxu1 %v511_v22 }
 0x37c   :  { %v617_v28 = vpop.f32.mrf.mxu1 }
 0x37d   :  { %v618_v30 = vadd.f32 %v801_v27, %v617_v28 }
 0x37e   :  { %v915_v29 = vpop.f32.mrf.mxu1 }
 0x37f   :  { %v624_v34 = vmax.f32 %v618_v30, 0.0 }
 0x380   :  { %v620_v31 = vpop.f32.mrf.mxu1 }
 0x381   :  { %v621_v32 = vadd.f32 %v801_v27, %v620_v31 }
 0x382   :  { %v916_v33 = vpop.f32.mrf.mxu1 }
 0x383   :  { %v625_v35 = vmax.f32 %v621_v32, 0.0 }
 0x385   :  { %v626_v36 = vpack.c.bf16 %v625_v35, %v624_v34 }
 0x387   :  { %934 = vmatmul.mubr.bf16.vlgmr.msra.gmra.mxu0 %v626_v36 }
 0x447   :  { %v732_v37 = vpop.f32.mrf.mxu0 }
 0x448   :  { %v733_v40 = vadd.f32 %v810_v23, %v732_v37 }
 0x449   :  { %v935_v38 = vpop.f32.mrf.mxu0 }
 0x44b   :  { %v735_v39 = vpop.f32.mrf.mxu0 }
 0x44c   :  { %v736_v41 = vadd.f32 %v810_v23, %v735_v39 }
 0x44d   :  { %v936_v42 = vpop.f32.mrf.mxu0 }
 0x44e   :  { %v826_v43 = vpack.c.bf16 %v736_v41, %v733_v40 }
 0x450   :  { %827 = vst [vmem:[#allocation13] sm:$0xff] %v826_v43  }
 0x451   :  { %1129 = shalt.err (!%p1126_p6)
}
 0x452   :  { %760 = dma.vmem_to_hbm [thread:$0]  %s755_s16, 128, %s1317_s11, [#allocation4], %s1153_s29, %s1153_s29, %s1154_s30  }
 0x453   :  { %1146 = dma.done.wait [#allocation4], 128  }
 0x454   :  { %1147 = vsyncadd [#allocation4], 4294967168 }
 0x455   :  { %764 = vsyncpa [#allocation3], 1 }
 0x456   :  { %765 = vsyncpa [#allocation6], 1 }
 0x457   :  { %766 = vsyncpa [#allocation9], 1 }
 0x458   :  { %767 = vsyncpa [#allocation12], 1 }
 0x459   :  { %768 = vsyncpa [#allocation4], 1 }

// kernel: tpu_custom_call.1
= control target key start
LH: loop header
LB: loop body
LE: loop exit
PB: predicated region body
PF: predicated region fallthrough
CT: control target
= control target key end

     0   :  { %16 = vsyncpa [#allocation3], 0  ;;  %s1306_s0 = inlined_call_operand.hbm [shape: bf16[16,32], index: 0, kind: input, shape index: {}]   ;;  %s1307_s1 = inlined_call_operand.hbm [shape: bf16[32,256], index: 1, kind: input, shape index: {}]   ;;  %s1308_s2 = inlined_call_operand.vmem [shape: f32[1,256], index: 2, kind: input, shape index: {}]   ;;  %s1309_s3 = inlined_call_operand.hbm [shape: bf16[256,128], index: 3, kind: input, shape index: {}]   ;;  %s1310_s4 = inlined_call_operand.vmem [shape: f32[1,128], index: 4, kind: input, shape index: {}]   ;;  %s1311_s5 = inlined_call_operand.hbm [shape: bf16[128,128], index: 5, kind: input, shape index: {}]   ;;  %s1312_s6 = inlined_call_operand.vmem [shape: f32[1,128], index: 6, kind: input, shape index: {}]   ;;  %s1313_s7 = inlined_call_operand.hbm [shape: bf16[128,128], index: 7, kind: input, shape index: {}]   ;;  %s1314_s8 = inlined_call_operand.vmem [shape: f32[1,128], index: 8, kind: input, shape index: {}]   ;;  %s1315_s9 = inlined_call_operand.hbm [shape: bf16[128,128], index: 9, kind: input, shape index: {}]   ;;  %s1316_s10 = inlined_call_operand.vmem [shape: f32[1,128], index: 10, kind: input, shape index: {}]   ;;  %s1317_s11 = inlined_call_operand.hbm [shape: bf16[16,128], index: 11, kind: output, shape index: {}]  }
   0x1   :  { %17 = vsyncpa [#allocation6], 0 }
   0x2   :  { %18 = vsyncpa [#allocation9], 0 }
   0x3   :  { %19 = vsyncpa [#allocation12], 0 }
   0x4   :  { %20 = vsyncpa [#allocation4], 0  ;;  %s1148_s17 = smov [#allocation5]  }
   0x5   :  { %s38_s18 = sshll.u32 %s1148_s17, 4  ;;  %s39_s18 = int_to_ptr.vmem [resolvable:$true] %s38_s18 }
   0x6   :  { %s1006_s19 = scalar_lea.vmem %s39_s18, 512  ;;  %p1011_p1 = scmp.lt.s32.totalorder %s39_s18, %s39_s18 }
   0x7   :  { %p1007_p0 = scmp.ne.s32.totalorder %s39_s18, %s1006_s19  ;;  %p1012_p2 = scmp.lt.s32.totalorder %s1006_s19, %s1006_s19 }
   0x9   :  { %p1013_p3 = por %p1012_p2, %p1011_p1 }
   0xb   :  { %p1014_p4 = pnand %p1013_p3, %p1007_p0 }
   0xd   :  { %1017 = shalt.err (!%p1014_p4)
}
   0xe   :  { %s1149_s20 = smov 128   ;;  %s1150_s21 = smov 8  }
   0xf   :  { %44 = dma.hbm_to_vmem [thread:$0]  %s1307_s1, 512, %s39_s18, [#allocation6], %s1149_s20, %s1149_s20, %s1150_s21  }
  0x10   :  { %s1151_s24 = smov [#allocation8]   ;;  %s1152_s26 = smov [#allocation2]  }
  0x11   :  { %s66_s25 = sshll.u32 %s1151_s24, 4  ;;  %s26_s27 = sshll.u32 %s1152_s26, 4  ;;  %s67_s25 = int_to_ptr.vmem [resolvable:$true] %s66_s25  ;;  %s27_s27 = int_to_ptr.vmem [resolvable:$true] %s26_s27 }
  0x12   :  { %s1026_s28 = scalar_lea.vmem %s67_s25, 1024  ;;  %p1031_p6 = scmp.lt.s32.totalorder %s67_s25, %s67_s25 }
  0x13   :  { %p1027_p5 = scmp.ne.s32.totalorder %s67_s25, %s1026_s28  ;;  %p1032_p7 = scmp.lt.s32.totalorder %s1026_s28, %s1026_s28 }
  0x15   :  { %p1033_p8 = por %p1032_p7, %p1031_p6 }
  0x17   :  { %p1034_p9 = pnand %p1033_p8, %p1027_p5 }
  0x19   :  { %1037 = shalt.err (!%p1034_p9)
}
  0x1a   :  { %s1153_s29 = smov 64   ;;  %s1154_s30 = smov 4  }
  0x1b   :  { %72 = dma.hbm_to_vmem [thread:$0]  %s1311_s5, 1024, %s67_s25, [#allocation9], %s1153_s29, %s1153_s29, %s1154_s30  }
  0x1c   :  { %s1046_s1 = scalar_lea.vmem %s27_s27, 128  ;;  %p1051_p11 = scmp.lt.s32.totalorder %s27_s27, %s27_s27 }
  0x1d   :  { %p1047_p10 = scmp.ne.s32.totalorder %s27_s27, %s1046_s1  ;;  %p1052_p12 = scmp.lt.s32.totalorder %s1046_s1, %s1046_s1 }
  0x1f   :  { %p1053_p13 = por %p1052_p12, %p1051_p11 }
  0x21   :  { %p1054_p0 = pnand %p1053_p13, %p1047_p10 }
  0x23   :  { %1057 = shalt.err (!%p1054_p0)
}
  0x24   :  { %32 = dma.hbm_to_vmem [thread:$0]  %s1306_s0, 128, %s27_s27, [#allocation3], %s1153_s29, %s1153_s29, %s1154_s30  }
  0x25   :  { %s1155_s16 = smov [#allocation7]   ;;  %s1156_s18 = smov [#allocation10]  }
  0x26   :  { %s52_s17 = sshll.u32 %s1155_s16, 4  ;;  %s80_s5 = sshll.u32 %s1156_s18, 4  ;;  %s53_s17 = int_to_ptr.vmem [resolvable:$true] %s52_s17  ;;  %s81_s5 = int_to_ptr.vmem [resolvable:$true] %s80_s5 }
  0x27   :  { %s1066_s19 = scalar_lea.vmem %s53_s17, 2048  ;;  %p1071_p2 = scmp.lt.s32.totalorder %s53_s17, %s53_s17 }
  0x28   :  { %p1067_p1 = scmp.ne.s32.totalorder %s53_s17, %s1066_s19  ;;  %p1072_p3 = scmp.lt.s32.totalorder %s1066_s19, %s1066_s19 }
  0x2a   :  { %p1073_p4 = por %p1072_p3, %p1071_p2 }
  0x2c   :  { %p1074_p5 = pnand %p1073_p4, %p1067_p1 }
  0x2e   :  { %1077 = shalt.err (!%p1074_p5)
}
  0x2f   :  { %58 = dma.hbm_to_vmem [thread:$0]  %s1309_s3, 2048, %s53_s17, [#allocation6], %s1153_s29, %s1153_s29, %s1154_s30  }
  0x30   :  { %s1086_s0 = scalar_lea.vmem %s81_s5, 1024  ;;  %p1091_p7 = scmp.lt.s32.totalorder %s81_s5, %s81_s5 }
  0x31   :  { %p1087_p6 = scmp.ne.s32.totalorder %s81_s5, %s1086_s0  ;;  %p1092_p8 = scmp.lt.s32.totalorder %s1086_s0, %s1086_s0 }
  0x33   :  { %p1093_p9 = por %p1092_p8, %p1091_p7 }
  0x35   :  { %p1094_p10 = pnand %p1093_p9, %p1087_p6 }
  0x37   :  { %1097 = shalt.err (!%p1094_p10)
}
  0x38   :  { %86 = dma.hbm_to_vmem [thread:$0]  %s1313_s7, 1024, %s81_s5, [#allocation9], %s1153_s29, %s1153_s29, %s1154_s30  }
  0x39   :  { %s1157_s24 = smov [#allocation11]  }
  0x3a   :  { %s94_s25 = sshll.u32 %s1157_s24, 4  ;;  %s95_s25 = int_to_ptr.vmem [resolvable:$true] %s94_s25 }
  0x3b   :  { %s1106_s26 = scalar_lea.vmem %s95_s25, 1024  ;;  %p1111_p12 = scmp.lt.s32.totalorder %s95_s25, %s95_s25 }
  0x3c   :  { %p1107_p11 = scmp.ne.s32.totalorder %s95_s25, %s1106_s26  ;;  %p1112_p13 = scmp.lt.s32.totalorder %s1106_s26, %s1106_s26 }
  0x3e   :  { %p1113_p0 = por %p1112_p13, %p1111_p12 }
  0x40   :  { %p1114_p1 = pnand %p1113_p0, %p1107_p11 }
  0x42   :  { %1117 = shalt.err (!%p1114_p1)
}
  0x43   :  { %100 = dma.hbm_to_vmem [thread:$0]  %s1315_s9, 1024, %s95_s25, [#allocation12], %s1153_s29, %s1153_s29, %s1154_s30  }
  0x44   :  { %1138 = dma.done.wait [#allocation3], 128  }
  0x45   :  { %1139 = vsyncadd [#allocation3], 4294967168 }
  0x46   :  { %1140 = dma.done.wait [#allocation6], 2560  }
  0x47   :  { %1141 = vsyncadd [#allocation6], 4294964736 }
  0x48   :  { %1142 = dma.done.wait [#allocation9], 2048  }
  0x49   :  { %1143 = vsyncadd [#allocation9], 4294965248 }
  0x4a   :  { %1144 = dma.done.wait [#allocation12], 1024  }
  0x4b   :  { %1145 = vsyncadd [#allocation12], 4294966272  ;;  %v1158_v0 = vmov 0   ;;  %v951_v1 = vld [vmem:[#allocation5 + $0x14] ss:$8 sps:$4 sm:$0xff]   ;;  %vm165_vm0 = vcmask 261120   ;;  %v130_v27 = vlaneseq }
  0x4c   :  { %201 = vmatprep.mubr.bf16.mxu0 %v1158_v0  ;;  %v953_v2 = vld [vmem:[#allocation5 + $0x10] ss:$8 sps:$4 sm:$0xff]   ;;  %181 = vmatprep.subr.bf16.mxu0 %v951_v1  ;;  %v954_v3 = vld [vmem:[#allocation5 + $0x4] ss:$8 sps:$4 sm:$0xff]   ;;  %v956_v4 = vld [vmem:[#allocation5] ss:$8 sps:$4 sm:$0xff]  }
  0x4d   :  { %182 = vmatpush1.bf16.msra.mxu0 %v953_v2  ;;  %v957_v5 = vld [vmem:[#allocation2] sm:$0xff]   ;;  %v960_v8 = vld [vmem:[#allocation7 + $0x70] sm:$0xff]   ;;  %v962_v10 = vld [vmem:[#allocation7 + $0x68] sm:$0xff]   ;;  %v1159_v23 = vmov 0.0   ;;  %v131_v28 = vshrl.u32 %v130_v27, 7  ;;  %vm1160_vm1 = vmmov 0  }
  0x4e   :  { %183 = vmatprep.subr.bf16.mxu0 %v954_v3  ;;  %v958_v6 = vld [vmem:[#allocation7 + $0x78] sm:$0xff]   ;;  %v961_v9 = vld [vmem:[#allocation7 + $0x30] sm:$0xff]   ;;  %v963_v11 = vld [vmem:[#allocation7 + $0x28] sm:$0xff]   ;;  %s1161_s15 = smov [#allocation13]  }
  0x4f   :  { %v959_v7 = vld [vmem:[#allocation7 + $0x38] sm:$0xff]   ;;  %828 = vmatprep.subr.bf16.mxu1 %v958_v6  ;;  %v964_v12 = vld [vmem:[#allocation7 + $0x60] sm:$0xff]   ;;  %v968_v16 = vld [vmem:[#allocation7 + $0x50] sm:$0xff]   ;;  %v136_v29 = vsub.s32 1, %v131_v28  ;;  %v132_v30 = vsub.s32 0, %v131_v28  ;;  %s754_s16 = sshll.u32 %s1161_s15, 4  ;;  %s755_s16 = int_to_ptr.vmem [resolvable:$true] %s754_s16 }
  0x50   :  { %829 = vmatpush3.bf16.msra.mxu1 %v959_v7  ;;  %v965_v13 = vld [vmem:[#allocation7 + $0x20] sm:$0xff]   ;;  %v966_v14 = vld [vmem:[#allocation7 + $0x58] sm:$0xff]   ;;  %v969_v17 = vld [vmem:[#allocation7 + $0x10] sm:$0xff]   ;;  %p1123_p3 = scmp.lt.s32.totalorder %s755_s16, %s755_s16 }
  0x51   :  { %184 = vmatpush1.bf16.msra.mxu0 %v956_v4  ;;  %830 = vmatprep.subr.bf16.mxu1 %v960_v8  ;;  %v967_v15 = vld [vmem:[#allocation7 + $0x18] sm:$0xff]   ;;  %v970_v18 = vld [vmem:[#allocation7 + $0x48] sm:$0xff]   ;;  %v972_v20 = vld [vmem:[#allocation7 + $0x40] sm:$0xff]  }
  0x52   :  { %v971_v19 = vld [vmem:[#allocation7 + $0x8] sm:$0xff]   ;;  %v973_v21 = vld [vmem:[#allocation7] sm:$0xff]   ;;  %v974_v22 = vld [vmem:[#allocation8 + $0x38] sm:$0xff]   ;;  %877 = vmatprep.subr.bf16.mxu0 %v1159_v23 }
  0x53   :  { %v975_v24 = vld [vmem:[#allocation8 + $0x30] sm:$0xff]   ;;  %v976_v25 = vld [vmem:[#allocation8 + $0x28] sm:$0xff]   ;;  %v977_v26 = vld [vmem:[#allocation8 + $0x20] sm:$0xff]  }
  0x54   :  { %774 = vmatmul.mubr.msk.bf16.vlgmr.msra.gmra.mxu0 %vm165_vm0, %v957_v5  ;;  %831 = vmatpush3.bf16.msra.mxu1 %v961_v9  ;;  %v128_v31 = vld [vmem:[%s1308_s2] sm:$0x3]  ;;  %v979_v49 = vld [vmem:[#allocation8 + $0x10] sm:$0xff]   ;;  %v980_v50 = vld [vmem:[#allocation8 + $0x8] sm:$0xff]  }
  0x55   :  { %832 = vmatprep.subr.bf16.mxu1 %v962_v10  ;;  %878 = vmatpush3.bf16.msra.mxu0 %v974_v22  ;;  %v137_v33 = vrot.slane %v128_v31, %v136_v29  ;;  %v133_v34 = vrot.slane %v128_v31, %v132_v30  ;;  %v978_v48 = vld [vmem:[#allocation8 + $0x18] sm:$0xff]   ;;  %v981_v51 = vld [vmem:[#allocation8] sm:$0xff]   ;;  %v983_v53 = vld [vmem:[#allocation10 + $0x30] sm:$0xff]  }
  0x56   :  { %879 = vmatprep.subr.bf16.mxu0 %v1159_v23  ;;  %893 = vmatprep.mubr.msk.bf16.mxu0 %vm1160_vm1, %v1159_v23  ;;  %v982_v52 = vld [vmem:[#allocation10 + $0x38] sm:$0xff]   ;;  %v984_v54 = vld [vmem:[#allocation10 + $0x28] sm:$0xff]   ;;  %v985_v55 = vld [vmem:[#allocation10 + $0x20] sm:$0xff]  }
  0x57   :  { %v986_v56 = vld [vmem:[#allocation10 + $0x18] sm:$0xff]   ;;  %v987_v5 = vld [vmem:[#allocation10 + $0x10] sm:$0xff]   ;;  %v988_v6 = vld [vmem:[#allocation10 + $0x8] sm:$0xff]  }
  0x58   :  { %833 = vmatpush3.bf16.msra.mxu1 %v963_v11  ;;  %v775_v60 = vld [vmem:[%s1310_s4] ss:$0 sm:$0xff]  ;;  %v989_v7 = vld [vmem:[#allocation10] sm:$0xff]   ;;  %v991_v9 = vld [vmem:[#allocation11 + $0x30] sm:$0xff]  }
  0x59   :  { %834 = vmatprep.subr.bf16.mxu1 %v964_v12  ;;  %880 = vmatpush3.bf16.msra.mxu0 %v975_v24  ;;  %v990_v8 = vld [vmem:[#allocation11 + $0x38] sm:$0xff]   ;;  %v992_v10 = vld [vmem:[#allocation11 + $0x28] sm:$0xff]   ;;  %v993_v11 = vld [vmem:[#allocation11 + $0x20] sm:$0xff]  }
  0x5a   :  { %881 = vmatprep.subr.bf16.mxu0 %v1159_v23  ;;  %v994_v12 = vld [vmem:[#allocation11 + $0x18] sm:$0xff]   ;;  %v995_v24 = vld [vmem:[#allocation11 + $0x10] sm:$0xff]  }
  0x5b   :  { %v801_v27 = vld [vmem:[%s1314_s8] ss:$0 sm:$0xff]  ;;  %s1118_s8 = scalar_lea.vmem %s755_s16, 128 }
  0x5c   :  { %835 = vmatpush3.bf16.msra.mxu1 %v965_v13  ;;  %v792_v13 = vld [vmem:[%s1312_s6] ss:$0 sm:$0xff]  ;;  %p1119_p2 = scmp.ne.s32.totalorder %s755_s16, %s1118_s8  ;;  %p1124_p4 = scmp.lt.s32.totalorder %s1118_s8, %s1118_s8 }
  0x5d   :  { %836 = vmatprep.subr.bf16.mxu1 %v966_v14  ;;  %882 = vmatpush3.bf16.msra.mxu0 %v976_v25  ;;  %v996_v25 = vld [vmem:[#allocation11 + $0x8] sm:$0xff]  }
  0x5e   :  { %883 = vmatprep.subr.bf16.mxu0 %v1159_v23  ;;  %p1125_p5 = por %p1124_p4, %p1123_p3 }
  0x60   :  { %837 = vmatpush3.bf16.msra.mxu1 %v967_v15  ;;  %p1126_p6 = pnand %p1125_p5, %p1119_p2 }
  0x61   :  { %838 = vmatprep.subr.bf16.mxu1 %v968_v16  ;;  %884 = vmatpush3.bf16.msra.mxu0 %v977_v26  ;;  %v997_v26 = vld [vmem:[#allocation11] sm:$0xff]  }
  0x62   :  { %885 = vmatprep.subr.bf16.mxu0 %v1159_v23 }
  0x64   :  { %839 = vmatpush3.bf16.msra.mxu1 %v969_v17 }
  0x65   :  { %840 = vmatprep.subr.bf16.mxu1 %v970_v18  ;;  %886 = vmatpush3.bf16.msra.mxu0 %v978_v48 }
  0x66   :  { %887 = vmatprep.subr.bf16.mxu0 %v1159_v23 }
  0x68   :  { %841 = vmatpush3.bf16.msra.mxu1 %v971_v19 }
  0x69   :  { %842 = vmatprep.subr.bf16.mxu1 %v972_v20  ;;  %888 = vmatpush3.bf16.msra.mxu0 %v979_v49 }
  0x6a   :  { %889 = vmatprep.subr.bf16.mxu0 %v1159_v23 }
  0x6c   :  { %843 = vmatpush3.bf16.msra.mxu1 %v973_v21 }
  0x6d   :  { %897 = vmatprep.subr.bf16.mxu1 %v1159_v23  ;;  %890 = vmatpush3.bf16.msra.mxu0 %v980_v50 }
  0x6e   :  { %891 = vmatprep.subr.bf16.mxu0 %v1159_v23 }
  0x71   :  { %892 = vmatpush3.bf16.msra.mxu0 %v981_v51 }
  0x72   :  { %917 = vmatprep.subr.bf16.mxu0 %v1159_v23 }
 0x114   :  { %v203_v32 = vpop.f32.mrf.mxu0 }
 0x115   :  { %v204_v39 = vadd.f32 %v203_v32, %v133_v34 }
 0x116   :  { %v205_v35 = vpop.f32.mrf.mxu0 }
 0x117   :  { %v206_v37 = vadd.f32 %v205_v35, %v137_v33  ;;  %v212_v45 = vmax.f32 %v204_v39, 0.0 }
 0x118   :  { %v207_v36 = vpop.f32.mrf.mxu0 }
 0x119   :  { %v208_v38 = vadd.f32 %v207_v36, %v133_v34  ;;  %v213_v43 = vmax.f32 %v206_v37, 0.0 }
 0x11a   :  { %v209_v40 = vpop.f32.mrf.mxu0 }
 0x11b   :  { %v210_v41 = vadd.f32 %v209_v40, %v137_v33  ;;  %v214_v42 = vmax.f32 %v208_v38, 0.0 }
 0x11d   :  { %v215_v44 = vmax.f32 %v210_v41, 0.0  ;;  %v216_v47 = vpack.c.bf16 %v214_v42, %v212_v45 }
 0x11f   :  { %v217_v46 = vpack.c.bf16 %v215_v44, %v213_v43 }
 0x121   :  { %385 = vmatprep.mubr.bf16.mxu1 %v217_v46 }
 0x122   :  { %386 = vmatmul.mubr.bf16.vlgmr.msra.gmra.mxu1 %v216_v47 }
 0x123   :  { %913 = vmatprep.mubr.msk.bf16.mxu1 %vm1160_vm1, %v1159_v23  ;;  %898 = vmatpush3.bf16.msra.mxu1 %v982_v52 }
 0x124   :  { %899 = vmatprep.subr.bf16.mxu1 %v1159_v23 }
 0x127   :  { %900 = vmatpush3.bf16.msra.mxu1 %v983_v53 }
 0x128   :  { %901 = vmatprep.subr.bf16.mxu1 %v1159_v23 }
 0x12b   :  { %902 = vmatpush3.bf16.msra.mxu1 %v984_v54 }
 0x12c   :  { %903 = vmatprep.subr.bf16.mxu1 %v1159_v23 }
 0x12f   :  { %904 = vmatpush3.bf16.msra.mxu1 %v985_v55 }
 0x130   :  { %905 = vmatprep.subr.bf16.mxu1 %v1159_v23 }
 0x133   :  { %906 = vmatpush3.bf16.msra.mxu1 %v986_v56 }
 0x134   :  { %907 = vmatprep.subr.bf16.mxu1 %v1159_v23 }
 0x137   :  { %908 = vmatpush3.bf16.msra.mxu1 %v987_v5 }
 0x138   :  { %909 = vmatprep.subr.bf16.mxu1 %v1159_v23 }
 0x13b   :  { %910 = vmatpush3.bf16.msra.mxu1 %v988_v6 }
 0x13c   :  { %911 = vmatprep.subr.bf16.mxu1 %v1159_v23 }
 0x13f   :  { %912 = vmatpush3.bf16.msra.mxu1 %v989_v7 }
 0x1e2   :  { %v844_v57 = vpop.f32.mrf.mxu1 }
 0x1e4   :  { %v845_v58 = vpop.f32.mrf.mxu1 }
 0x1e5   :  { %v846_v59 = vadd.f32 %v845_v58, %v844_v57 }
 0x1e6   :  { %v847_v61 = vpop.f32.mrf.mxu1 }
 0x1e7   :  { %v388_v63 = vadd.f32 %v846_v59, %v775_v60 }
 0x1e8   :  { %v848_v62 = vpop.f32.mrf.mxu1 }
 0x1e9   :  { %v849_v0 = vadd.f32 %v848_v62, %v847_v61  ;;  %v394_v2 = vmax.f32 %v388_v63, 0.0 }
 0x1eb   :  { %v391_v1 = vadd.f32 %v849_v0, %v775_v60 }
 0x1ed   :  { %v395_v3 = vmax.f32 %v391_v1, 0.0 }
 0x1ef   :  { %v396_v4 = vpack.c.bf16 %v395_v3, %v394_v2 }
 0x1f1   :  { %894 = vmatmul.mubr.bf16.vlgmr.msra.gmra.mxu0 %v396_v4 }
 0x1f2   :  { %933 = vmatprep.mubr.msk.bf16.mxu0 %vm1160_vm1, %v1159_v23  ;;  %918 = vmatpush3.bf16.msra.mxu0 %v990_v8 }
 0x1f3   :  { %919 = vmatprep.subr.bf16.mxu0 %v1159_v23 }
 0x1f6   :  { %920 = vmatpush3.bf16.msra.mxu0 %v991_v9 }
 0x1f7   :  { %921 = vmatprep.subr.bf16.mxu0 %v1159_v23 }
 0x1fa   :  { %922 = vmatpush3.bf16.msra.mxu0 %v992_v10 }
 0x1fb   :  { %923 = vmatprep.subr.bf16.mxu0 %v1159_v23 }
 0x1fe   :  { %924 = vmatpush3.bf16.msra.mxu0 %v993_v11 }
 0x1ff   :  { %925 = vmatprep.subr.bf16.mxu0 %v1159_v23 }
 0x202   :  { %926 = vmatpush3.bf16.msra.mxu0 %v994_v12 }
 0x203   :  { %927 = vmatprep.subr.bf16.mxu0 %v1159_v23 }
 0x206   :  { %928 = vmatpush3.bf16.msra.mxu0 %v995_v24 }
 0x207   :  { %929 = vmatprep.subr.bf16.mxu0 %v1159_v23 }
 0x20a   :  { %930 = vmatpush3.bf16.msra.mxu0 %v996_v25 }
 0x20b   :  { %931 = vmatprep.subr.bf16.mxu0 %v1159_v23  ;;  %v810_v23 = vld [vmem:[%s1316_s10] ss:$0 sm:$0xff] }
 0x20e   :  { %932 = vmatpush3.bf16.msra.mxu0 %v997_v26 }
 0x2b1   :  { %v502_v14 = vpop.f32.mrf.mxu0 }
 0x2b2   :  { %v503_v16 = vadd.f32 %v792_v13, %v502_v14 }
 0x2b3   :  { %v895_v15 = vpop.f32.mrf.mxu0 }
 0x2b4   :  { %v509_v20 = vmax.f32 %v503_v16, 0.0 }
 0x2b5   :  { %v505_v17 = vpop.f32.mrf.mxu0 }
 0x2b6   :  { %v506_v18 = vadd.f32 %v792_v13, %v505_v17 }
 0x2b7   :  { %v896_v19 = vpop.f32.mrf.mxu0 }
 0x2b8   :  { %v510_v21 = vmax.f32 %v506_v18, 0.0 }
 0x2ba   :  { %v511_v22 = vpack.c.bf16 %v510_v21, %v509_v20 }
 0x2bc   :  { %914 = vmatmul.mubr.bf16.vlgmr.msra.gmra.mxu1 %v511_v22 }
 0x37c   :  { %v617_v28 = vpop.f32.mrf.mxu1 }
 0x37d   :  { %v618_v30 = vadd.f32 %v801_v27, %v617_v28 }
 0x37e   :  { %v915_v29 = vpop.f32.mrf.mxu1 }
 0x37f   :  { %v624_v34 = vmax.f32 %v618_v30, 0.0 }
 0x380   :  { %v620_v31 = vpop.f32.mrf.mxu1 }
 0x381   :  { %v621_v32 = vadd.f32 %v801_v27, %v620_v31 }
 0x382   :  { %v916_v33 = vpop.f32.mrf.mxu1 }
 0x383   :  { %v625_v35 = vmax.f32 %v621_v32, 0.0 }
 0x385   :  { %v626_v36 = vpack.c.bf16 %v625_v35, %v624_v34 }
 0x387   :  { %934 = vmatmul.mubr.bf16.vlgmr.msra.gmra.mxu0 %v626_v36 }
 0x447   :  { %v732_v37 = vpop.f32.mrf.mxu0 }
 0x448   :  { %v733_v40 = vadd.f32 %v810_v23, %v732_v37 }
 0x449   :  { %v935_v38 = vpop.f32.mrf.mxu0 }
 0x44b   :  { %v735_v39 = vpop.f32.mrf.mxu0 }
 0x44c   :  { %v736_v41 = vadd.f32 %v810_v23, %v735_v39 }
 0x44d   :  { %v936_v42 = vpop.f32.mrf.mxu0 }
 0x44e   :  { %v826_v43 = vpack.c.bf16 %v736_v41, %v733_v40 }
 0x450   :  { %827 = vst [vmem:[#allocation13] sm:$0xff] %v826_v43  }
 0x451   :  { %1129 = shalt.err (!%p1126_p6)
}
 0x452   :  { %760 = dma.vmem_to_hbm [thread:$0]  %s755_s16, 128, %s1317_s11, [#allocation4], %s1153_s29, %s1153_s29, %s1154_s30  }
 0x453   :  { %1146 = dma.done.wait [#allocation4], 128  }
 0x454   :  { %1147 = vsyncadd [#allocation4], 4294967168 }
 0x455   :  { %764 = vsyncpa [#allocation3], 1 }
 0x456   :  { %765 = vsyncpa [#allocation6], 1 }
 0x457   :  { %766 = vsyncpa [#allocation9], 1 }
 0x458   :  { %767 = vsyncpa [#allocation12], 1 }
 0x459   :  { %768 = vsyncpa [#allocation4], 1 }

</bundles_post_ra>
